<compile_context>
chip_gen: v7x
topology: tpu7x:2x2x1
jax: 0.10.0
libtpu: 0.0.40
codegen_flags: <defaults>
</compile_context>

<pallas_src>
import functools

import numpy as np
import jax
import jax.numpy as jnp
from jax import lax
from jax.experimental import pallas as pl
from jax.experimental.pallas import tpu as pltpu


# ----------------------------------------------------------------------------
# tiling helpers
# ----------------------------------------------------------------------------

def _round_up(x, m):
    return ((x + m - 1) // m) * m


def _pick_dim(d, candidates, align):
    """Pick (tile, padded_dim).  Pads to a tile multiple and prefers the largest
    tile whose padding waste is within ~6% of the best achievable."""
    d_al = _round_up(d, align)
    if d_al <= candidates[-1]:
        return d_al, d_al
    best = min(_round_up(d, t) for t in candidates)
    thr = best + best // 16
    for t in candidates:                       # descending
        p = _round_up(d, t)
        if p <= thr:
            return t, p
    t = candidates[-1]
    return t, _round_up(d, t)


def _pad_operands(a, b):
    """Cast to bf16 and pad (M,K)x(K,N) to tile multiples."""
    M, K = a.shape
    _, N = b.shape
    tm, Mp = _pick_dim(M, (512, 256, 128), 16)
    Kp = _round_up(K, 128)
    tn, Np = _pick_dim(N, (256, 128), 128)
    a_p = jnp.pad(a.astype(jnp.bfloat16), ((0, Mp - M), (0, Kp - K)))
    b_p = jnp.pad(b.astype(jnp.bfloat16), ((0, Kp - K), (0, Np - N)))
    return a_p, b_p, tm, tn, Mp, Kp, Np


# ----------------------------------------------------------------------------
# Pallas kernels
# ----------------------------------------------------------------------------

def _matmul_stats_kernel(a_ref, b_ref, o_ref, s_ref, q_ref):
    """bf16 x bf16 -> f32 MXU matmul (single K step) with a BatchNorm-stats
    epilogue (per-row-tile column sum / sum-of-squares, replicated over 8
    sublanes to keep the output block (8,128)-tileable).  z is stored bf16."""
    z = jnp.dot(a_ref[...], b_ref[...], preferred_element_type=jnp.float32)
    o_ref[...] = z.astype(o_ref.dtype)
    zs = jnp.sum(z, axis=0)          # (tn,)
    zq = jnp.sum(z * z, axis=0)      # (tn,)
    s_ref[...] = jnp.broadcast_to(zs, s_ref.shape)
    q_ref[...] = jnp.broadcast_to(zq, q_ref.shape)


def _matmul_plain_kernel(a_ref, b_ref, o_ref):
    """Plain bf16 x bf16 -> f32 matmul (no stats epilogue)."""
    o_ref[...] = jnp.dot(a_ref[...], b_ref[...],
                         preferred_element_type=jnp.float32)


def _pallas_matmul_stats(a, b):
    """Returns (z_padded (Mp,Np) bf16, col_sum (Np,), col_sumsq (Np,), tm)."""
    a_p, b_p, tm, tn, Mp, Kp, Np = _pad_operands(a, b)
    nm, nn = Mp // tm, Np // tn
    z, s, q = pl.pallas_call(
        _matmul_stats_kernel,
        out_shape=[jax.ShapeDtypeStruct((Mp, Np), jnp.bfloat16),
                   jax.ShapeDtypeStruct((nm, 8, Np), jnp.float32),
                   jax.ShapeDtypeStruct((nm, 8, Np), jnp.float32)],
        grid_spec=pltpu.PrefetchScalarGridSpec(
            num_scalar_prefetch=0,
            grid=(nm, nn),
            in_specs=[pl.BlockSpec((tm, Kp), lambda i, j: (i, 0)),
                      pl.BlockSpec((Kp, tn), lambda i, j: (0, j))],
            out_specs=[pl.BlockSpec((tm, tn), lambda i, j: (i, j)),
                       pl.BlockSpec((1, 8, tn), lambda i, j: (i, 0, j)),
                       pl.BlockSpec((1, 8, tn), lambda i, j: (i, 0, j))]),
        compiler_params=pltpu.CompilerParams(
            dimension_semantics=("parallel", "parallel")),
    )(a_p, b_p)
    col_sum = jnp.sum(s[:, 0, :], axis=0)
    col_sq = jnp.sum(q[:, 0, :], axis=0)
    return z, col_sum, col_sq, tm


def pallas_matmul(a, b):
    """Plain (M,K)@(K,N) -> (M,N) f32 (no BN-stats epilogue)."""
    M = a.shape[0]
    N = b.shape[1]
    a_p, b_p, tm, tn, Mp, Kp, Np = _pad_operands(a, b)
    nm, nn = Mp // tm, Np // tn
    z = pl.pallas_call(
        _matmul_plain_kernel,
        out_shape=jax.ShapeDtypeStruct((Mp, Np), jnp.float32),
        grid_spec=pltpu.PrefetchScalarGridSpec(
            num_scalar_prefetch=0,
            grid=(nm, nn),
            in_specs=[pl.BlockSpec((tm, Kp), lambda i, j: (i, 0)),
                      pl.BlockSpec((Kp, tn), lambda i, j: (0, j))],
            out_specs=pl.BlockSpec((tm, tn), lambda i, j: (i, j))),
        compiler_params=pltpu.CompilerParams(
            dimension_semantics=("parallel", "parallel")),
    )(a_p, b_p)
    return z[:M, :N]


def _scale_bias_relu_kernel(z_ref, s_ref, b_ref, y_ref):
    """Single-pass training-mode BatchNorm (pre-reduced scale/bias) + ReLU,
    bf16 in / bf16 out, f32 arithmetic."""
    z = z_ref[...].astype(jnp.float32)
    y_ref[...] = jnp.maximum(z * s_ref[...] + b_ref[...], 0.0).astype(y_ref.dtype)


def _pallas_scale_bias_relu(z, scale, bias, tm):
    Mp, Np = z.shape
    return pl.pallas_call(
        _scale_bias_relu_kernel,
        out_shape=jax.ShapeDtypeStruct((Mp, Np), jnp.bfloat16),
        grid_spec=pltpu.PrefetchScalarGridSpec(
            num_scalar_prefetch=0,
            grid=(Mp // tm,),
            in_specs=[pl.BlockSpec((tm, Np), lambda i: (i, 0)),
                      pl.BlockSpec((1, Np), lambda i: (0, 0)),
                      pl.BlockSpec((1, Np), lambda i: (0, 0))],
            out_specs=pl.BlockSpec((tm, Np), lambda i: (i, 0))),
        compiler_params=pltpu.CompilerParams(
            dimension_semantics=("parallel",)),
    )(z, scale, bias)


def _maxpool3x3_s2_kernel(x_ref, o_ref):
    """3x3 / stride-2 / VALID max pool.  H-direction stride-2 via even/odd
    leading-dim reshape in-kernel; W-direction is 3-tap stride-1 (the cheap
    stride-2 column subsample is done by XLA in the wrapper)."""
    xv = x_ref[...]                                     # (1, h, w, c)
    _, ho, wm, c = o_ref.shape                          # wm == w - 2
    w = xv.shape[2]
    ev = xv[:, 0:2 * ho, :, :].reshape(1, ho, 2, w, c)
    od = xv[:, 1:2 * ho + 1, :, :].reshape(1, ho, 2, w, c)
    hm = jnp.maximum(jnp.maximum(ev[:, :, 0], ev[:, :, 1]), od[:, :, 1])
    o_ref[...] = jnp.maximum(
        jnp.maximum(hm[:, :, 0:wm, :], hm[:, :, 1:wm + 1, :]),
        hm[:, :, 2:wm + 2, :]).astype(o_ref.dtype)


@jax.jit
def max_pool3x3_s2(x):
    n, h, w, c = x.shape
    ho = (h - 3) // 2 + 1
    wo = (w - 3) // 2 + 1
    y = pl.pallas_call(
        _maxpool3x3_s2_kernel,
        out_shape=jax.ShapeDtypeStruct((n, ho, w - 2, c), x.dtype),
        grid_spec=pltpu.PrefetchScalarGridSpec(
            num_scalar_prefetch=0,
            grid=(n,),
            in_specs=[pl.BlockSpec((1, h, w, c), lambda i: (i, 0, 0, 0))],
            out_specs=pl.BlockSpec((1, ho, w - 2, c), lambda i: (i, 0, 0, 0))),
        compiler_params=pltpu.CompilerParams(
            dimension_semantics=("parallel",),
            vmem_limit_bytes=40 * 1024 * 1024),   # safe on v7x (64 MiB VMEM)
    )(x)
    return y[:, :, 0:2 * wo - 1:2, :]             # stride-2 W subsample (XLA)


def _avgpool3x3_s1_kernel(x_ref, o_ref):
    xv = x_ref[...]
    _, ho, wo, c = o_ref.shape
    acc = jnp.zeros((1, ho, wo, c), jnp.float32)
    for di in range(3):
        for dj in range(3):
            acc = acc + xv[:, di:di + ho, dj:dj + wo, :].astype(jnp.float32)
    o_ref[...] = (acc * (1.0 / 9.0)).astype(o_ref.dtype)


@jax.jit
def avg_pool3x3_s1_p1(x):
    """avg_pool2d(k=3, s=1, p=1), count_include_pad=True (torch default)."""
    xp = jnp.pad(x, ((0, 0), (1, 1), (1, 1), (0, 0)))
    n, h, w, c = xp.shape
    ho, wo = h - 2, w - 2
    return pl.pallas_call(
        _avgpool3x3_s1_kernel,
        out_shape=jax.ShapeDtypeStruct((n, ho, wo, c), x.dtype),
        grid_spec=pltpu.PrefetchScalarGridSpec(
            num_scalar_prefetch=0,
            grid=(n,),
            in_specs=[pl.BlockSpec((1, h, w, c), lambda i: (i, 0, 0, 0))],
            out_specs=pl.BlockSpec((1, ho, wo, c), lambda i: (i, 0, 0, 0))),
        compiler_params=pltpu.CompilerParams(
            dimension_semantics=("parallel",)),
    )(xp)


def _gap_kernel(x_ref, o_ref):
    o_ref[...] = jnp.mean(x_ref[...].astype(jnp.float32), axis=(1, 2),
                          keepdims=True)


@jax.jit
def global_avg_pool(x):
    """== F.avg_pool2d(x, kernel_size=H) when the kernel covers the full extent."""
    n, h, w, c = x.shape
    return pl.pallas_call(
        _gap_kernel,
        out_shape=jax.ShapeDtypeStruct((n, 1, 1, c), jnp.float32),
        grid_spec=pltpu.PrefetchScalarGridSpec(
            num_scalar_prefetch=0,
            grid=(n,),
            in_specs=[pl.BlockSpec((1, h, w, c), lambda i: (i, 0, 0, 0))],
            out_specs=pl.BlockSpec((1, 1, 1, c), lambda i: (i, 0, 0, 0))),
        compiler_params=pltpu.CompilerParams(
            dimension_semantics=("parallel",)),
    )(x)


def _dropout_kernel(x_ref, u_ref, o_ref, *, rate):
    keep = u_ref[...] >= rate
    o_ref[...] = jnp.where(keep, x_ref[...] * (1.0 / (1.0 - rate)), 0.0)


@functools.partial(jax.jit, static_argnames=("rate",))
def pallas_dropout(x, u, *, rate):
    """Training-mode dropout; mask uniforms `u` are drawn with jax.random
    outside the kernel (portable across interpret / Mosaic paths)."""
    kernel = functools.partial(_dropout_kernel, rate=float(rate))
    return pl.pallas_call(
        kernel, out_shape=jax.ShapeDtypeStruct(x.shape, jnp.float32))(x, u)


# ----------------------------------------------------------------------------
# glue: im2col, conv+BN+ReLU, linear, bilinear upsample, parameters
# ----------------------------------------------------------------------------

def _im2col(x, *, kh, kw, sh, sw, ph, pw):
    if ph or pw:
        x = jnp.pad(x, ((0, 0), (ph, ph), (pw, pw), (0, 0)))
    n, h, w, c = x.shape
    ho = (h - kh) // sh + 1
    wo = (w - kw) // sw + 1
    cols = []
    for i in range(kh):
        for j in range(kw):
            cols.append(x[:, i:i + sh * (ho - 1) + 1:sh,
                          j:j + sw * (wo - 1) + 1:sw, :])
    patches = jnp.stack(cols, axis=3)                 # (N, Ho, Wo, kh*kw, C)
    return patches.reshape(n * ho * wo, kh * kw * c)  # (M, K)


@functools.partial(jax.jit, static_argnames=("stride", "padding"))
def conv_bn_relu(x, w, stride=(1, 1), padding=(0, 0)):
    """BasicConv2d: conv(bias=False) + BatchNorm2d(eps=1e-3, training-mode batch
    stats, gamma=1, beta=0) + ReLU.  x: NHWC, w: (kh, kw, cin, cout).  bf16 out."""
    n, h_in, w_in, cin = x.shape
    kh, kw, _, cout = w.shape
    ho = (h_in + 2 * padding[0] - kh) // stride[0] + 1
    wo = (w_in + 2 * padding[1] - kw) // stride[1] + 1
    xb = x.astype(jnp.bfloat16)
    if (kh, kw) == (1, 1) and stride == (1, 1) and padding == (0, 0):
        a = xb.reshape(n * h_in * w_in, cin)          # 1x1 conv: no im2col copy
    else:
        a = _im2col(xb, kh=kh, kw=kw, sh=stride[0], sw=stride[1],
                    ph=padding[0], pw=padding[1])
    m = a.shape[0]
    z, col_sum, col_sq, tm = _pallas_matmul_stats(a, w.reshape(kh * kw * cin, cout))
    inv_m = 1.0 / float(m)
    mean = col_sum * inv_m
    # single-pass variance (clamped >= 0); documented precision caveat.
    var = jnp.maximum(col_sq * inv_m - mean * mean, 0.0)
    inv = lax.rsqrt(var + 1e-3)
    scale = inv[None, :]
    bias = (-mean * inv)[None, :]
    y = _pallas_scale_bias_relu(z, scale, bias, tm)   # bf16
    return y[:m, :cout].reshape(n, ho, wo, cout)


@jax.jit
def linear(x, w, b):
    return pallas_matmul(x, w) + b


def _bilinear_matrix(out_size, in_size):
    # nn.Upsample(mode='bilinear', align_corners=False) interpolation weights.
    a = np.zeros((out_size, in_size), dtype=np.float32)
    scale = in_size / out_size
    for o in range(out_size):
        src = (o + 0.5) * scale - 0.5
        src = max(src, 0.0)
        i0 = min(int(np.floor(src)), in_size - 1)
        i1 = min(i0 + 1, in_size - 1)
        w1 = src - i0
        a[o, i0] += 1.0 - w1
        a[o, i1] += w1
    return jnp.asarray(a)


@functools.partial(jax.jit, static_argnames=("out_h", "out_w"))
def bilinear_upsample(x, *, out_h, out_w):
    n, h, w, c = x.shape
    ah = _bilinear_matrix(out_h, h)
    aw = _bilinear_matrix(out_w, w)
    # interpolate height then width (small Pallas matmuls, no stats epilogue)
    xr = jnp.transpose(x, (1, 0, 2, 3)).reshape(h, n * w * c)
    y = pallas_matmul(ah, xr).reshape(out_h, n, w, c).transpose(1, 0, 2, 3)
    yr = jnp.transpose(y, (2, 0, 1, 3)).reshape(w, n * out_h * c)
    z = pallas_matmul(aw, yr).reshape(out_w, n, out_h, c).transpose(1, 2, 0, 3)
    return z


class Params:
    """Deterministic synthetic weights: truncnorm(-2, 2) * 0.1 (module init).
    TODO(synk): pretrained inception weights from model_zoo cannot be fetched here."""

    def __init__(self, key):
        self._key = key
        self._count = 0

    def _next(self):
        self._count += 1
        return jax.random.fold_in(self._key, self._count)

    def conv(self, kh, kw, cin, cout, stddev=0.1):
        return jax.random.truncated_normal(
            self._next(), -2.0, 2.0, (kh, kw, cin, cout), jnp.float32) * stddev

    def linear(self, cin, cout, stddev=0.1):
        w = jax.random.truncated_normal(
            self._next(), -2.0, 2.0, (cin, cout), jnp.float32) * stddev
        b = jnp.zeros((cout,), jnp.float32)
        return w, b


def basic_conv2d(x, pg, cout, kernel_size, stride=1, padding=0):
    if isinstance(kernel_size, int):
        kernel_size = (kernel_size, kernel_size)
    if isinstance(stride, int):
        stride = (stride, stride)
    if isinstance(padding, int):
        padding = (padding, padding)
    w = pg.conv(kernel_size[0], kernel_size[1], x.shape[-1], cout)
    return conv_bn_relu(x, w, stride=stride, padding=padding)


def fused_conv1x1(x, pg, couts):
    """Several 1x1 BasicConv2d branches on the same input -> one matmul.
    BatchNorm is per output channel so the fused math is identical."""
    cin = x.shape[-1]
    w = jnp.concatenate([pg.conv(1, 1, cin, c) for c in couts], axis=-1)
    y = conv_bn_relu(x, w)
    outs, off = [], 0
    for c in couts:
        outs.append(y[..., off:off + c])
        off += c
    return outs


# ----------------------------------------------------------------------------
# Inception blocks (torchvision InceptionV3 topology)
# ----------------------------------------------------------------------------

def inception_a(x, pg, pool_features):
    b1, b5, b3 = fused_conv1x1(x, pg, (64, 48, 64))
    b5 = basic_conv2d(b5, pg, 64, 5, padding=2)
    b3 = basic_conv2d(b3, pg, 96, 3, padding=1)
    b3 = basic_conv2d(b3, pg, 96, 3, padding=1)
    bp = basic_conv2d(avg_pool3x3_s1_p1(x), pg, pool_features, 1)
    return jnp.concatenate([b1, b5, b3, bp], axis=-1)


def inception_b(x, pg):
    b3 = basic_conv2d(x, pg, 384, 3, stride=2)
    bd = basic_conv2d(x, pg, 64, 1)
    bd = basic_conv2d(bd, pg, 96, 3, padding=1)
    bd = basic_conv2d(bd, pg, 96, 3, stride=2)
    bp = max_pool3x3_s2(x)
    return jnp.concatenate([b3, bd, bp], axis=-1)


def inception_c(x, pg, c7):
    b1, b7, bd = fused_conv1x1(x, pg, (192, c7, c7))
    b7 = basic_conv2d(b7, pg, c7, (1, 7), padding=(0, 3))
    b7 = basic_conv2d(b7, pg, 192, (7, 1), padding=(3, 0))
    bd = basic_conv2d(bd, pg, c7, (7, 1), padding=(3, 0))
    bd = basic_conv2d(bd, pg, c7, (1, 7), padding=(0, 3))
    bd = basic_conv2d(bd, pg, c7, (7, 1), padding=(3, 0))
    bd = basic_conv2d(bd, pg, 192, (1, 7), padding=(0, 3))
    bp = basic_conv2d(avg_pool3x3_s1_p1(x), pg, 192, 1)
    return jnp.concatenate([b1, b7, bd, bp], axis=-1)


def inception_d(x, pg):
    b3, b7 = fused_conv1x1(x, pg, (192, 192))
    b3 = basic_conv2d(b3, pg, 320, 3, stride=2)
    b7 = basic_conv2d(b7, pg, 192, (1, 7), padding=(0, 3))
    b7 = basic_conv2d(b7, pg, 192, (7, 1), padding=(3, 0))
    b7 = basic_conv2d(b7, pg, 192, 3, stride=2)
    bp = max_pool3x3_s2(x)
    return jnp.concatenate([b3, b7, bp], axis=-1)


def inception_e(x, pg):
    b1, b3, bd = fused_conv1x1(x, pg, (320, 384, 448))
    b3 = jnp.concatenate([basic_conv2d(b3, pg, 384, (1, 3), padding=(0, 1)),
                          basic_conv2d(b3, pg, 384, (3, 1), padding=(1, 0))], axis=-1)
    bd = basic_conv2d(bd, pg, 384, 3, padding=1)
    bd = jnp.concatenate([basic_conv2d(bd, pg, 384, (1, 3), padding=(0, 1)),
                          basic_conv2d(bd, pg, 384, (3, 1), padding=(1, 0))], axis=-1)
    bp = basic_conv2d(avg_pool3x3_s1_p1(x), pg, 192, 1)
    return jnp.concatenate([b1, b3, bd, bp], axis=-1)


def inception_v3_upto_pool3(x, pg, drop_key, num_classes=1000, transform_input=True):
    """x: (N, 299, 299, 3) NHWC.  Returns (logits, pooled_features_NHWC)."""
    if transform_input:
        scale = jnp.array([0.229 / 0.5, 0.224 / 0.5, 0.225 / 0.5], jnp.float32)
        shift = jnp.array([(0.485 - 0.5) / 0.5, (0.456 - 0.5) / 0.5,
                           (0.406 - 0.5) / 0.5], jnp.float32)
        x = x * scale + shift
    x = basic_conv2d(x, pg, 32, 3, stride=2)      # Conv2d_1a_3x3
    x = basic_conv2d(x, pg, 32, 3)                # Conv2d_2a_3x3
    x = basic_conv2d(x, pg, 64, 3, padding=1)     # Conv2d_2b_3x3
    x = max_pool3x3_s2(x)
    x = basic_conv2d(x, pg, 80, 1)                # Conv2d_3b_1x1
    x = basic_conv2d(x, pg, 192, 3)               # Conv2d_4a_3x3
    x = max_pool3x3_s2(x)
    x = inception_a(x, pg, 32)                    # Mixed_5b
    x = inception_a(x, pg, 64)                    # Mixed_5c
    x = inception_a(x, pg, 64)                    # Mixed_5d
    x = inception_b(x, pg)                        # Mixed_6a
    x = inception_c(x, pg, 128)                   # Mixed_6b
    x = inception_c(x, pg, 160)                   # Mixed_6c
    x = inception_c(x, pg, 160)                   # Mixed_6d
    x = inception_c(x, pg, 192)                   # Mixed_6e
    # TODO(synk): AuxLogits is constructed in __init__ but never used in forward; omitted.
    x = inception_d(x, pg)                        # Mixed_7a
    x = inception_e(x, pg)                        # Mixed_7b
    x = inception_e(x, pg)                        # Mixed_7c
    x_pool = global_avg_pool(x)                   # F.avg_pool2d(x, 8) -> (N,1,1,2048)
    flat = x_pool.reshape(x_pool.shape[0], -1)    # (N, 2048)
    u = jax.random.uniform(drop_key, flat.shape, jnp.float32)
    drop = pallas_dropout(flat, u, rate=0.5)      # training-mode dropout
    w_fc, b_fc = pg.linear(2048, num_classes)
    logits = linear(drop, w_fc, b_fc)
    return logits, x_pool


def fid_forward(x_nchw, key, num_classes=1000):
    """FID.forward for fid_type='inceptionv3':
       Sequential(BWtoRGB, Upsample(299,299,bilinear), InceptionV3UptoPool3)."""
    x = jnp.transpose(x_nchw, (0, 2, 3, 1)).astype(jnp.float32)  # NCHW -> NHWC
    if x.shape[-1] == 1:                                         # BWtoRGB
        x = jnp.concatenate([x, x, x], axis=-1)
    x = bilinear_upsample(x, out_h=299, out_w=299)               # nn.Upsample
    k_params, k_drop = jax.random.split(key)
    pg = Params(k_params)
    logits, pool = inception_v3_upto_pool3(x, pg, k_drop, num_classes=num_classes)
    feat = jnp.transpose(pool, (0, 3, 1, 2))                     # (N, 2048, 1, 1)
    return logits, feat


# ----------------------------------------------------------------------------

if __name__ == "__main__":
    key = jax.random.PRNGKey(0)
    k_x, k_w = jax.random.split(key)
    # small input consistent with FID(input_shape=[3,16,16], ...) and batch_size=2
    x = jax.random.normal(k_x, (2, 3, 16, 16), jnp.float32)  # NCHW, like PyTorch
    logits, feat = fid_forward(x, k_w)
    logits = jax.block_until_ready(logits)
    feat = jax.block_until_ready(feat)
    assert logits.shape == (2, 1000)
    assert feat.shape == (2, 2048, 1, 1)
    assert bool(jnp.all(jnp.isfinite(logits))) and bool(jnp.all(jnp.isfinite(feat)))
    print("KERNEL_OK")
</pallas_src>

<mosaic_0001>
module attributes {stable_mosaic.version = 11 : i64} {
  func.func @_matmul_plain_kernel(%arg0: i32, %arg1: i32, %arg2: memref<128x128xbf16, #tpu.memory_space<vmem>>, %arg3: memref<128x128xbf16, #tpu.memory_space<vmem>>, %arg4: memref<128x128xf32, #tpu.memory_space<vmem>>) attributes {dimension_semantics = [#tpu.dimension_semantics<parallel>, #tpu.dimension_semantics<parallel>], iteration_bounds = array<i64: 3, 1>, scalar_prefetch = 0 : i64, scratch_operands = 0 : i64, tpu.core_type = #tpu.core_type<tc>, window_params = [{transform_indices = @transform_0, window_bounds = array<i64: 128, 128>}, {transform_indices = @transform_1, window_bounds = array<i64: 128, 128>}, {transform_indices = @transform_2, window_bounds = array<i64: 128, 128>}]} {
    %c0 = arith.constant 0 : index
    %c0_0 = arith.constant 0 : index
    %0 = vector.load %arg2[%c0, %c0_0] : memref<128x128xbf16, #tpu.memory_space<vmem>>, vector<128x128xbf16>
    %c0_1 = arith.constant 0 : index
    %c0_2 = arith.constant 0 : index
    %1 = vector.load %arg3[%c0_1, %c0_2] : memref<128x128xbf16, #tpu.memory_space<vmem>>, vector<128x128xbf16>
    %cst = arith.constant dense<0.000000e+00> : vector<128x128xf32>
    %2 = tpu.matmul %0, %1, %cst {dimension_numbers = #tpu.dot_dimension_numbers<[1], [0], [0], [1], [0, 0, 1, 1], [], []>} : vector<128x128xbf16>, vector<128x128xbf16>, vector<128x128xf32> -> vector<128x128xf32>
    %c0_3 = arith.constant 0 : index
    %c0_4 = arith.constant 0 : index
    %3 = vector.load %arg4[%c0_3, %c0_4] : memref<128x128xf32, #tpu.memory_space<vmem>>, vector<128x128xf32>
    tpu.vector_store %arg4[%c0_3, %c0_4], %2 {strides = array<i32>} : memref<128x128xf32, #tpu.memory_space<vmem>>, vector<128x128xf32>,
    return
  }
  func.func @transform_0(%arg0: i32, %arg1: i32) -> (i32, i32) {
    %c0_i32 = arith.constant 0 : i32
    %c0_i32_0 = arith.constant 0 : i32
    return %arg0, %c0_i32 : i32, i32
  }
  func.func @transform_1(%arg0: i32, %arg1: i32) -> (i32, i32) {
    %c0_i32 = arith.constant 0 : i32
    %c0_i32_0 = arith.constant 0 : i32
    return %c0_i32, %arg1 : i32, i32
  }
  func.func @transform_2(%arg0: i32, %arg1: i32) -> (i32, i32) {
    %c0_i32 = arith.constant 0 : i32
    return %arg0, %arg1 : i32, i32
  }
}

module attributes {stable_mosaic.version = 11 : i64} {
  func.func @_matmul_plain_kernel(%arg0: i32, %arg1: i32, %arg2: memref<128x128xbf16, #tpu.memory_space<vmem>>, %arg3: memref<128x128xbf16, #tpu.memory_space<vmem>>, %arg4: memref<128x128xf32, #tpu.memory_space<vmem>>) attributes {dimension_semantics = [#tpu.dimension_semantics<parallel>, #tpu.dimension_semantics<parallel>], iteration_bounds = array<i64: 3, 15>, scalar_prefetch = 0 : i64, scratch_operands = 0 : i64, tpu.core_type = #tpu.core_type<tc>, window_params = [{transform_indices = @transform_0, window_bounds = array<i64: 128, 128>}, {transform_indices = @transform_1, window_bounds = array<i64: 128, 128>}, {transform_indices = @transform_2, window_bounds = array<i64: 128, 128>}]} {
    %c0 = arith.constant 0 : index
    %c0_0 = arith.constant 0 : index
    %0 = vector.load %arg2[%c0, %c0_0] : memref<128x128xbf16, #tpu.memory_space<vmem>>, vector<128x128xbf16>
    %c0_1 = arith.constant 0 : index
    %c0_2 = arith.constant 0 : index
    %1 = vector.load %arg3[%c0_1, %c0_2] : memref<128x128xbf16, #tpu.memory_space<vmem>>, vector<128x128xbf16>
    %cst = arith.constant dense<0.000000e+00> : vector<128x128xf32>
    %2 = tpu.matmul %0, %1, %cst {dimension_numbers = #tpu.dot_dimension_numbers<[1], [0], [0], [1], [0, 0, 1, 1], [], []>} : vector<128x128xbf16>, vector<128x128xbf16>, vector<128x128xf32> -> vector<128x128xf32>
    %c0_3 = arith.constant 0 : index
    %c0_4 = arith.constant 0 : index
    %3 = vector.load %arg4[%c0_3, %c0_4] : memref<128x128xf32, #tpu.memory_space<vmem>>, vector<128x128xf32>
    tpu.vector_store %arg4[%c0_3, %c0_4], %2 {strides = array<i32>} : memref<128x128xf32, #tpu.memory_space<vmem>>, vector<128x128xf32>,
    return
  }
  func.func @transform_0(%arg0: i32, %arg1: i32) -> (i32, i32) {
    %c0_i32 = arith.constant 0 : i32
    %c0_i32_0 = arith.constant 0 : i32
    return %arg0, %c0_i32 : i32, i32
  }
  func.func @transform_1(%arg0: i32, %arg1: i32) -> (i32, i32) {
    %c0_i32 = arith.constant 0 : i32
    %c0_i32_0 = arith.constant 0 : i32
    return %c0_i32, %arg1 : i32, i32
  }
  func.func @transform_2(%arg0: i32, %arg1: i32) -> (i32, i32) {
    %c0_i32 = arith.constant 0 : i32
    return %arg0, %arg1 : i32, i32
  }
}

</mosaic_0001>

<bundles_post_ra>
// kernel: bilinear_upsample.2
= control target key start
LH: loop header
LB: loop body
LE: loop exit
PB: predicated region body
PF: predicated region fallthrough
CT: control target
= control target key end

     0   :  { %7 = vsyncpa [#allocation3], 0  ;;  %s989_s0 = inlined_call_operand.hbm [shape: bf16[384,128], index: 0, kind: input, shape index: {}]   ;;  %s990_s1 = inlined_call_operand.vmem [shape: bf16[128,128], index: 1, kind: input, shape index: {}]   ;;  %s991_s2 = inlined_call_operand.vmem [shape: f32[384,128], index: 2, kind: output, shape index: {}]  }
   0x1   :  { %9 = vsyncpa [#allocation3 + $0x1], 0  ;;  %s814_s9 = smov 0   ;;  %s816_s10 = smov 0  }
   0x2   :  { %s818_s11 = smov 0   ;;  %s820_s12 = smov 0  }
   0x3   :  { %s822_s13 = smov 0   ;;  %s824_s14 = smov 0  }
   0x4 LB: > { %s546_s15 = sadd.s32 4294967295, %s794_s14   ;;  %s27_s16 = sadd.s32 1, %s790_s13  ;;  %s794_s14 = sphi %s824_s14, %s15_s14   ;;  %s790_s13 = sphi %s822_s13, %s999_s13   ;;  %s786_s12 = sphi %s820_s12, %s998_s12   ;;  %s782_s11 = sphi %s818_s11, %s997_s11   ;;  %s778_s10 = sphi %s816_s10, %s996_s10   ;;  %s774_s9 = sphi %s814_s9, %s995_s9  }
   0x5   : > { %p29_p0 = scmp.ge.s32.totalorder %s27_s16, 3  ;;  %s34_s17 = sadd.s32 1, %s782_s11 }
   0x6   : > { %p41_p1 = scmp.ne.s32.totalorder %s782_s11, %s778_s10  ;;  %p42_p2 = scmp.eq.s32.totalorder %s794_s14, 0 }
   0x7   : > { %s1001_s16 = smov (%p29_p0, %s27_s16), 0  ;;  %p47_p4 = scmp.ne.s32.totalorder %s778_s10, %s774_s9 }
   0x8   : > { %p850_p3 = por %p42_p2, %p41_p1  ;;  %s31_s19 = ssub.s32 %s790_s13, %s1001_s16 }
   0x9   : > { %p48_p5 = scmp.eq.s32.totalorder %s546_s15, 0  ;;  %p32_p6 = scmp.eq.s32.totalorder %s31_s19, 0 }
   0xa   : > { %p647_p8 = scmp.lt.s32.totalorder %s794_s14, 3  ;;  %s132_s22 = sand.u32 1, %s782_s11  }
   0xb   : > { %p857_p7 = por %p48_p5, %p47_p4  ;;  %s576_s23 = sshll.u32 %s790_s13, 10 }
   0xc   : > { %s863_s21 = scalar_select %p32_p6, %s782_s11, %s34_s17  }
   0xd   : > { %s551_s24 = sshll.u32 %s132_s22, 6  ;;  %s870_s27 = scalar_lea.hbm %s989_s0, %s576_s23 }
   0xe   : > { %s136_s28 = scalar_lea.vmem [#allocation2], %s551_s24  ;;  %p874_p9 = pnand %p647_p8, %p850_p3 }
   0xf   : > { %s143_s29 = sshll.u32 %s136_s28, 4  ;;  %s880_s3 = scalar_lea.sflag [#allocation3], %s132_s22  ;;  %s878_s29 = int_to_ptr.vmem [resolvable:$true] %s143_s29 }
  0x10   : > { %s714_s4 = scalar_lea.hbm %s870_s27, 1024  ;;  %p716_p11 = pneg %p874_p9 }
  0x11   : > { %p715_p10 = scmp.ne.s32.totalorder %s870_s27, %s714_s4  ;;  %s719_s7 = scalar_lea.hbm %s989_s0, 3072 }
  0x12   : > { %p720_p0 = scmp.lt.u32.totalorder %s870_s27, %s989_s0  ;;  %p721_p1 = scmp.lt.u32.totalorder %s719_s7, %s714_s4 }
  0x13   : > { %p717_p12 = pnand %p716_p11, %p715_p10  ;;  %p723_p3 = scmp.lt.u32.totalorder %s714_s4, %s870_s27 }
  0x14   : > { %p722_p2 = por %p721_p1, %p720_p0 }
  0x15   : > { %p718_p13 = pneg %p717_p12 }
  0x16   : > { %p724_p4 = por %p723_p3, %p722_p2 }
  0x18   : > { %p725_p5 = pnand %p724_p4, %p718_p13 }
  0x1a   : > { %728 = shalt.err (!%p725_p5)
}
  0x1b   : > { %s729_s15 = scalar_lea.vmem %s878_s29, 1024  ;;  %s796_s17 = smov [#allocation2]  }
  0x1c   : > { %p730_p6 = scmp.ne.s32.totalorder %s878_s29, %s729_s15  ;;  %s734_s18 = sshll.u32 %s796_s17, 4  ;;  %s735_s18 = int_to_ptr.vmem [resolvable:$false] %s734_s18 }
  0x1d   : > { %s736_s19 = scalar_lea.vmem %s735_s18, 2048  ;;  %p737_p12 = scmp.lt.s32.totalorder %s878_s29, %s735_s18 }
  0x1e   : > { %p732_p8 = pnand %p730_p6, %p716_p11  ;;  %p738_p0 = scmp.lt.s32.totalorder %s736_s19, %s729_s15 }
  0x20   : > { %p733_p10 = pneg %p732_p8  ;;  %p739_p1 = por %p738_p0, %p737_p12 }
  0x22   : > { %p740_p2 = pnand %p739_p1, %p733_p10 }
  0x24   : > { %743 = shalt.err (!%p740_p2)
}
  0x25   : > { %s797_s22 = smov 64   ;;  %s798_s23 = smov 4  }
  0x26   : > { %646 = dma.hbm_to_vmem [thread:$0]  (!%p874_p9), %s870_s27, 1024, %s878_s29, %s880_s3, %s797_s22, %s797_s22, %s798_s23  }
  0x27   : > { %p554_p11 = scmp.ge.s32.totalorder %s794_s14, 1  ;;  %p151_p13 = scmp.lt.s32.totalorder %s794_s14, 4 }
  0x29   : > { %p152_p3 = pnand %p554_p11, %p151_p13 }
  0x2a   : > { %s157_s24 = sand.u32 (!%p152_p3), 1, %s778_s10  }
  0x2b   : > { %155 = sbr.rel (%p152_p3) target bundleno = 308 (0x134), region = 28  ;;  %s555_s25 = sshll.u32 (!%p152_p3), %s157_s24, 6 }
  0x2c   : > { %s158_s26 = scalar_lea.sflag (!%p152_p3), [#allocation3], %s157_s24  ;;  %s911_s28 = scalar_lea.vmem (!%p152_p3), [#allocation2], %s555_s25 }
  0x32   : > { %769 = dma.done.wait (%p857_p7), %s158_s26, 1024  }
  0x33   : > { %771 = vsyncadd (%p857_p7), %s158_s26, 4294966272  ;;  %v698_v0 = vld [vmem:[%s990_s1] sm:$0xff]   ;;  %v699_v1 = vld [vmem:[%s990_s1 + $0x8] sm:$0xff]   ;;  %s556_s23 = sshll.u32 %s786_s12, 4 }
  0x34   : > { %593 = vmatprep.subr.bf16.mxu0 %v698_v0  ;;  %625 = vmatprep.subr.bf16.mxu1 %v698_v0  ;;  %v700_v2 = vld [vmem:[%s990_s1 + $0x10] sm:$0xff]   ;;  %v701_v3 = vld [vmem:[%s990_s1 + $0x18] sm:$0xff]   ;;  %v706_v4 = vld [vmem:[%s911_s28] sm:$0xff]   ;;  %p195_p7 = scmp.lt.s32.totalorder %s556_s23, 47 }
  0x35   : > { %594 = vmatpush3.bf16.msra.mxu0 %v698_v0  ;;  %633 = vmatpush3.bf16.msra.mxu1 %v698_v0  ;;  %v707_v5 = vld [vmem:[%s911_s28 + $0x20] sm:$0xff]   ;;  %v703_v7 = vld [vmem:[%s990_s1 + $0x28] sm:$0xff]   ;;  %v704_v8 = vld [vmem:[%s990_s1 + $0x30] sm:$0xff]  }
  0x36   : > { %595 = vmatprep.subr.bf16.mxu0 %v699_v1  ;;  %626 = vmatprep.subr.bf16.mxu1 %v699_v1  ;;  %v702_v6 = vld [vmem:[%s990_s1 + $0x20] sm:$0xff]   ;;  %v705_v9 = vld [vmem:[%s990_s1 + $0x38] sm:$0xff]   ;;  %v708_v10 = vld [vmem:[%s911_s28 + $0x8] sm:$0xff]   ;;  %s1003_s23 = smov (!%p195_p7, %s556_s23), 47 }
  0x37   : > { %609 = vmatprep.mubr.bf16.mxu0 %v706_v4  ;;  %617 = vmatprep.mubr.bf16.mxu1 %v707_v5  ;;  %v709_v11 = vld [vmem:[%s911_s28 + $0x28] sm:$0xff]   ;;  %v710_v12 = vld [vmem:[%s911_s28 + $0x10] sm:$0xff]   ;;  %v712_v14 = vld [vmem:[%s911_s28 + $0x18] sm:$0xff]   ;;  %s557_s24 = sshll.u32 %s1003_s23, 3 }
  0x38   : > { %v711_v13 = vld [vmem:[%s911_s28 + $0x30] sm:$0xff]   ;;  %v713_v15 = vld [vmem:[%s911_s28 + $0x38] sm:$0xff]   ;;  %s953_s4 = scalar_lea.vmem %s991_s2, %s557_s24 }
  0x39   : > { %596 = vmatpush3.bf16.msra.mxu0 %v699_v1  ;;  %634 = vmatpush3.bf16.msra.mxu1 %v699_v1 }
  0x3a   : > { %597 = vmatprep.subr.bf16.mxu0 %v700_v2  ;;  %627 = vmatprep.subr.bf16.mxu1 %v700_v2 }
  0x3d   : > { %598 = vmatpush3.bf16.msra.mxu0 %v700_v2  ;;  %635 = vmatpush3.bf16.msra.mxu1 %v700_v2 }
  0x3e   : > { %599 = vmatprep.subr.bf16.mxu0 %v701_v3  ;;  %628 = vmatprep.subr.bf16.mxu1 %v701_v3 }
  0x41   : > { %600 = vmatpush3.bf16.msra.mxu0 %v701_v3  ;;  %636 = vmatpush3.bf16.msra.mxu1 %v701_v3 }
  0x42   : > { %601 = vmatprep.subr.bf16.mxu0 %v702_v6  ;;  %629 = vmatprep.subr.bf16.mxu1 %v702_v6 }
  0x45   : > { %602 = vmatpush3.bf16.msra.mxu0 %v702_v6  ;;  %637 = vmatpush3.bf16.msra.mxu1 %v702_v6 }
  0x46   : > { %603 = vmatprep.subr.bf16.mxu0 %v703_v7  ;;  %630 = vmatprep.subr.bf16.mxu1 %v703_v7 }
  0x49   : > { %604 = vmatpush3.bf16.msra.mxu0 %v703_v7  ;;  %638 = vmatpush3.bf16.msra.mxu1 %v703_v7 }
  0x4a   : > { %605 = vmatprep.subr.bf16.mxu0 %v704_v8  ;;  %631 = vmatprep.subr.bf16.mxu1 %v704_v8 }
  0x4d   : > { %606 = vmatpush3.bf16.msra.mxu0 %v704_v8  ;;  %639 = vmatpush3.bf16.msra.mxu1 %v704_v8 }
  0x4e   : > { %607 = vmatprep.subr.bf16.mxu0 %v705_v9  ;;  %632 = vmatprep.subr.bf16.mxu1 %v705_v9 }
  0x51   : > { %608 = vmatpush3.bf16.msra.mxu0 %v705_v9  ;;  %640 = vmatpush3.bf16.msra.mxu1 %v705_v9 }
  0x54   : > { %610 = vmatmul.mubr.bf16.vlgmr.msra.gmra.mrb[0].mxu0 %v708_v10  ;;  %618 = vmatmul.mubr.bf16.vlgmr.msra.gmra.mrb[0].mxu1 %v709_v11 }
  0x55   : > { %613 = vmatprep.mubr.bf16.mxu0 %v710_v12  ;;  %621 = vmatprep.mubr.bf16.mxu1 %v711_v13 }
  0x5c   : > { %614 = vmatmul.mubr.bf16.gmra.mrb[4].mxu0 %v712_v14  ;;  %622 = vmatmul.mubr.bf16.gmra.mrb[4].mxu1 %v713_v15 }
 0x127   : > { %v611_v16 = vpop.f32.mrb[0].mxu0  ;;  %v619_v17 = vpop.f32.mrb[0].mxu1 }
 0x128   : > { %431 = vst [vmem:[%s953_s4 + $0x10] sm:$0xff] %v611_v16  ;;  %439 = vst [vmem:[%s953_s4 + $0x50] sm:$0xff] %v619_v17  ;;  %v366_v18 = vpop.f32.mrb[1].mxu0  ;;  %v398_v19 = vpop.f32.mrb[1].mxu1 }
 0x129   : > { %429 = vst [vmem:[%s953_s4] sm:$0xff] %v366_v18  ;;  %437 = vst [vmem:[%s953_s4 + $0x40] sm:$0xff] %v398_v19  ;;  %v612_v20 = vpop.f32.mrb[2].mxu0  ;;  %v620_v21 = vpop.f32.mrb[2].mxu1 }
 0x12a   : > { %432 = vst [vmem:[%s953_s4 + $0x18] sm:$0xff] %v612_v20  ;;  %440 = vst [vmem:[%s953_s4 + $0x58] sm:$0xff] %v620_v21  ;;  %v369_v22 = vpop.f32.mrb[3].mxu0  ;;  %v401_v23 = vpop.f32.mrb[3].mxu1 }
 0x12b   : > { %430 = vst [vmem:[%s953_s4 + $0x8] sm:$0xff] %v369_v22  ;;  %438 = vst [vmem:[%s953_s4 + $0x48] sm:$0xff] %v401_v23 }
 0x12f   : > { %v615_v24 = vpop.f32.mrb[4].mxu0  ;;  %v623_v25 = vpop.f32.mrb[4].mxu1 }
 0x130   : > { %435 = vst [vmem:[%s953_s4 + $0x30] sm:$0xff] %v615_v24  ;;  %443 = vst [vmem:[%s953_s4 + $0x70] sm:$0xff] %v623_v25  ;;  %v382_v26 = vpop.f32.mrb[5].mxu0  ;;  %v414_v27 = vpop.f32.mrb[5].mxu1 }
 0x131   : > { %433 = vst [vmem:[%s953_s4 + $0x20] sm:$0xff] %v382_v26  ;;  %441 = vst [vmem:[%s953_s4 + $0x60] sm:$0xff] %v414_v27  ;;  %v616_v28 = vpop.f32.mrb[6].mxu0  ;;  %v624_v29 = vpop.f32.mrb[6].mxu1 }
 0x132   : > { %436 = vst [vmem:[%s953_s4 + $0x38] sm:$0xff] %v616_v28  ;;  %444 = vst [vmem:[%s953_s4 + $0x78] sm:$0xff] %v624_v29  ;;  %v385_v30 = vpop.f32.mrb[7].mxu0  ;;  %v417_v31 = vpop.f32.mrb[7].mxu1 }
 0x133   : > { %434 = vst [vmem:[%s953_s4 + $0x28] sm:$0xff] %v385_v30  ;;  %442 = vst [vmem:[%s953_s4 + $0x68] sm:$0xff] %v417_v31 }
 0x134 PF: > { %s15_s14 = sadd.s32 1, %s794_s14   ;;  %s995_s9 = smov %s778_s10 }
 0x135   : > { %p12_p9 = scmp.ge.s32.totalorder %s15_s14, 5   ;;  %s996_s10 = smov %s782_s11 }
 0x136   : > { %s997_s11 = smov %s863_s21  ;;  %s998_s12 = smov %s790_s13 }
 0x137   : > { %s999_s13 = smov %s1001_s16  ;;  %14 = sbr.rel (!%p12_p9) target bundleno = 4 (0x4), region = 71 }
 0x13e   :  { %473 = vsyncpa [#allocation3], 1 }
 0x13f   :  { %475 = vsyncpa [#allocation3 + $0x1], 1 }

// kernel: bilinear_upsample.3
= control target key start
LH: loop header
LB: loop body
LE: loop exit
PB: predicated region body
PF: predicated region fallthrough
CT: control target
= control target key end

     0   :  { %s977_s9 = smov 0   ;;  %s979_s10 = smov 0   ;;  %s1171_s0 = inlined_call_operand.vmem [shape: bf16[384,128], index: 0, kind: input, shape index: {}]   ;;  %s1172_s1 = inlined_call_operand.vmem [shape: bf16[128,1920], index: 1, kind: input, shape index: {}]   ;;  %s1173_s2 = inlined_call_operand.vmem [shape: f32[384,1920], index: 2, kind: output, shape index: {}]  }
   0x1   :  { %s981_s11 = smov 0   ;;  %s983_s12 = smov 0  }
   0x2   :  { %s985_s13 = smov 0   ;;  %s987_s14 = smov 0  }
   0x3   :  { %s989_s15 = smov 0   ;;  %s991_s16 = smov 0  }
   0x4   :  { %s993_s17 = smov 0  }
   0x5 LB: > { %s704_s18 = sadd.s32 4294967295, %s960_s17   ;;  %s21_s19 = sadd.s32 1, %s952_s15  ;;  %s960_s17 = sphi %s993_s17, %s12_s17   ;;  %s956_s16 = sphi %s991_s16, %s1182_s16   ;;  %s952_s15 = sphi %s989_s15, %s1181_s15   ;;  %s948_s14 = sphi %s987_s14, %s1180_s14   ;;  %s944_s13 = sphi %s985_s13, %s1179_s13   ;;  %s940_s12 = sphi %s983_s12, %s1178_s12   ;;  %s936_s11 = sphi %s981_s11, %s1177_s11   ;;  %s932_s10 = sphi %s979_s10, %s1176_s10   ;;  %s928_s9 = sphi %s977_s9, %s1175_s9  }
   0x6   : > { %p22_p0 = scmp.ge.s32.totalorder %s21_s19, 15  ;;  %s24_s20 = sadd.s32 1, %s956_s16 }
   0x7   : > { %s57_s21 = sadd.s32 1, %s940_s12  ;;  %p64_p1 = scmp.ne.s32.totalorder %s940_s12, %s936_s11 }
   0x8   : > { %s1184_s19 = smov (%p22_p0, %s21_s19), 0  ;;  %s1186_s20 = smov (!%p22_p0, %s24_s20), %s956_s16 }
   0x9   : > { %s54_s22 = ssub.s32 %s952_s15, %s1184_s19  ;;  %p65_p2 = scmp.eq.s32.totalorder %s960_s17, 0 }
   0xa   : > { %p26_p3 = scmp.ge.s32.totalorder %s1186_s20, 3  ;;  %p55_p4 = scmp.eq.s32.totalorder %s54_s22, 0 }
   0xb   : > { %p66_p5 = por %p65_p2, %p64_p1  ;;  %s85_s23 = sadd.s32 1, %s932_s10 }
   0xc   : > { %s1188_s20 = smov (%p26_p3, %s1186_s20), 0  ;;  %p95_p6 = scmp.ne.s32.totalorder %s932_s10, %s928_s9 }
   0xd   : > { %s1038_s24 = scalar_select %p55_p4, %s940_s12, %s57_s21  }
   0xe   : > { %s80_s25 = ssub.s32 %s956_s16, %s1188_s20  ;;  %p96_p7 = scmp.eq.s32.totalorder %s704_s18, 44 }
   0xf   : > { %s82_s26 = sor.u32 %s80_s25, %s54_s22  ;;  %p707_p10 = scmp.ge.s32.totalorder %s960_s17, 45 }
  0x10   : > { %p83_p8 = scmp.eq.s32.totalorder %s82_s26, 0  ;;  %p1044_p9 = por %p96_p7, %p95_p6 }
  0x11   : > { %118 = sbr.rel (%p707_p10) target bundleno = 38 (0x26), region = 16 }
  0x12   : > { %s1049_s28 = scalar_select %p83_p8, %s932_s10, %s85_s23  }
  0x18   : > { %130 = sbr.rel (!%p66_p5) target bundleno = 38 (0x26), region = 24  ;;  %s132_s29 = sand.u32 (%p66_p5), 1, %s940_s12  }
  0x19   : > { %s709_s30 = sshll.u32 (%p66_p5), %s952_s15, 2  ;;  %s708_s3 = sshll.u32 (%p66_p5), %s132_s29, 6 }
  0x1a   : > { %s1057_s6 = scalar_lea.vmem (%p66_p5), %s1172_s1, %s709_s30  ;;  %s134_s7 = scalar_lea.vmem (%p66_p5), [#allocation2], %s708_s3 }
  0x1b   : > { %v152_v0 = vld [vmem:[%s1057_s6] sm:$0xf] (%p66_p5)  ;;  %v154_v1 = vld [vmem:[%s1057_s6 + $0x3c] sm:$0xf] (%p66_p5)  ;;  %v156_v2 = vld [vmem:[%s1057_s6 + $0x78] sm:$0xf] (%p66_p5) }
  0x1c   : > { %153 = vst [vmem:[%s134_s7] sm:$0xf] (%p66_p5), %v152_v0  ;;  %155 = vst [vmem:[%s134_s7 + $0x4] sm:$0xf] (%p66_p5), %v154_v1  ;;  %v158_v3 = vld [vmem:[%s1057_s6 + $0xb4] sm:$0xf] (%p66_p5) }
  0x1d   : > { %v160_v4 = vld [vmem:[%s1057_s6 + $0xf0] sm:$0xf] (%p66_p5)  ;;  %157 = vst [vmem:[%s134_s7 + $0x8] sm:$0xf] (%p66_p5), %v156_v2  ;;  %159 = vst [vmem:[%s134_s7 + $0xc] sm:$0xf] (%p66_p5), %v158_v3 }
  0x1e   : > { %161 = vst [vmem:[%s134_s7 + $0x10] sm:$0xf] (%p66_p5), %v160_v4  ;;  %v162_v5 = vld [vmem:[%s1057_s6 + $0x12c] sm:$0xf] (%p66_p5)  ;;  %v164_v6 = vld [vmem:[%s1057_s6 + $0x168] sm:$0xf] (%p66_p5) }
  0x1f   : > { %v166_v7 = vld [vmem:[%s1057_s6 + $0x1a4] sm:$0xf]  ;;  %163 = vst [vmem:[%s134_s7 + $0x14] sm:$0xf] %v162_v5  ;;  %165 = vst [vmem:[%s134_s7 + $0x18] sm:$0xf] %v164_v6 }
  0x20   : > { %167 = vst [vmem:[%s134_s7 + $0x1c] sm:$0xf] %v166_v7  ;;  %v168_v8 = vld [vmem:[%s1057_s6 + $0x1e0] sm:$0xf]  ;;  %v170_v9 = vld [vmem:[%s1057_s6 + $0x21c] sm:$0xf] }
  0x21   : > { %v172_v10 = vld [vmem:[%s1057_s6 + $0x258] sm:$0xf]  ;;  %169 = vst [vmem:[%s134_s7 + $0x20] sm:$0xf] %v168_v8  ;;  %171 = vst [vmem:[%s134_s7 + $0x24] sm:$0xf] %v170_v9 }
  0x22   : > { %173 = vst [vmem:[%s134_s7 + $0x28] sm:$0xf] %v172_v10  ;;  %v174_v11 = vld [vmem:[%s1057_s6 + $0x294] sm:$0xf]  ;;  %v176_v12 = vld [vmem:[%s1057_s6 + $0x2d0] sm:$0xf] }
  0x23   : > { %v178_v13 = vld [vmem:[%s1057_s6 + $0x30c] sm:$0xf]  ;;  %175 = vst [vmem:[%s134_s7 + $0x2c] sm:$0xf] %v174_v11  ;;  %177 = vst [vmem:[%s134_s7 + $0x30] sm:$0xf] %v176_v12 }
  0x24   : > { %179 = vst [vmem:[%s134_s7 + $0x34] sm:$0xf] %v178_v13  ;;  %v180_v14 = vld [vmem:[%s1057_s6 + $0x348] sm:$0xf]  ;;  %v182_v15 = vld [vmem:[%s1057_s6 + $0x384] sm:$0xf] }
  0x25   : > { %181 = vst [vmem:[%s134_s7 + $0x38] sm:$0xf] %v180_v14  ;;  %183 = vst [vmem:[%s134_s7 + $0x3c] sm:$0xf] %v182_v15 }
  0x26 PF: > { %p710_p11 = scmp.ge.s32.totalorder %s960_s17, 1  ;;  %p237_p12 = scmp.lt.s32.totalorder %s960_s17, 46 }
  0x28   : > { %p238_p13 = pnand %p710_p11, %p237_p12 }
  0x29   : > { %s244_s8 = sand.u32 (!%p238_p13), 1, %s936_s11   ;;  %s713_s18 = sshll.u32 (!%p238_p13), %s948_s14, 4 }
  0x2a   : > { %241 = sbr.rel (%p238_p13) target bundleno = 310 (0x136), region = 65  ;;  %s711_s21 = sshll.u32 (!%p238_p13), %s244_s8, 6 }
  0x2b   : > { %p270_p0 = scmp.lt.s32.totalorder (!%p238_p13), %s713_s18, 47  ;;  %s1079_s22 = scalar_lea.vmem (!%p238_p13), [#allocation2], %s711_s21 }
  0x2c   : > { %v874_v16 = vld [vmem:[%s1079_s22] sm:$0xff] (!%p238_p13)   ;;  %v875_v17 = vld [vmem:[%s1079_s22 + $0x8] sm:$0xff] (!%p238_p13)   ;;  %v876_v18 = vld [vmem:[%s1079_s22 + $0x10] sm:$0xff] (!%p238_p13)   ;;  %s266_s29 = sand.u32 (!%p238_p13), 1, %s928_s9  }
  0x2d   : > { %753 = vmatprep.subr.bf16.mxu0 (!%p238_p13), %v874_v16  ;;  %785 = vmatprep.subr.bf16.mxu1 (!%p238_p13), %v874_v16  ;;  %v877_v19 = vld [vmem:[%s1079_s22 + $0x18] sm:$0xff] (!%p238_p13)   ;;  %v878_v22 = vld [vmem:[%s1079_s22 + $0x20] sm:$0xff] (!%p238_p13)   ;;  %v879_v23 = vld [vmem:[%s1079_s22 + $0x28] sm:$0xff] (!%p238_p13)   ;;  %s712_s30 = sshll.u32 (!%p238_p13), %s266_s29, 7 }
  0x2e   : > { %754 = vmatpush3.bf16.msra.mxu0 (!%p238_p13), %v874_v16  ;;  %793 = vmatpush3.bf16.msra.mxu1 (!%p238_p13), %v874_v16  ;;  %v880_v24 = vld [vmem:[%s1079_s22 + $0x30] sm:$0xff] (!%p238_p13)   ;;  %v881_v25 = vld [vmem:[%s1079_s22 + $0x38] sm:$0xff] (!%p238_p13)   ;;  %s1103_s3 = scalar_lea.vmem (!%p238_p13), [#allocation3], %s712_s30 }
  0x2f   : > { %755 = vmatprep.subr.bf16.mxu0 (!%p238_p13), %v875_v17  ;;  %786 = vmatprep.subr.bf16.mxu1 (!%p238_p13), %v875_v17 }
  0x31   : > { %s1190_s18 = smov (!%p270_p0, %s713_s18), 47  ;;  %s801_s9 = smul.u32 (%p1044_p9), 240, %s948_s14 }
  0x32   : > { %s714_s23 = sshll.u32 %s1190_s18, 2  ;;  %756 = vmatpush3.bf16.msra.mxu0 %v875_v17  ;;  %794 = vmatpush3.bf16.msra.mxu1 %v875_v17 }
  0x33   : > { %s1087_s26 = scalar_lea.vmem %s1171_s0, %s714_s23  ;;  %757 = vmatprep.subr.bf16.mxu0 %v876_v18  ;;  %787 = vmatprep.subr.bf16.mxu1 %v876_v18  ;;  %s527_s27 = sadd.s32 (%p1044_p9), %s944_s13, %s801_s9 }
  0x34   : > { %v882_v20 = vld [vmem:[%s1087_s26] sm:$0xff]   ;;  %v884_v26 = vld [vmem:[%s1087_s26 + $0x8] sm:$0xff]   ;;  %v886_v28 = vld [vmem:[%s1087_s26 + $0x10] sm:$0xff]   ;;  %s734_s4 = sshll.u32 (%p1044_p9), %s527_s27, 3 }
  0x35   : > { %v883_v21 = vld [vmem:[%s1087_s26 + $0x20] sm:$0xff]   ;;  %769 = vmatprep.mubr.bf16.mxu0 %v882_v20  ;;  %v885_v27 = vld [vmem:[%s1087_s26 + $0x28] sm:$0xff]   ;;  %v887_v29 = vld [vmem:[%s1087_s26 + $0x30] sm:$0xff]   ;;  %s529_s14 = scalar_lea.vmem (%p1044_p9), %s1173_s2, %s734_s4 }
  0x36   : > { %758 = vmatpush3.bf16.msra.mxu0 %v876_v18  ;;  %795 = vmatpush3.bf16.msra.mxu1 %v876_v18  ;;  %v888_v30 = vld [vmem:[%s1087_s26 + $0x18] sm:$0xff]  }
  0x37   : > { %759 = vmatprep.subr.bf16.mxu0 %v877_v19  ;;  %788 = vmatprep.subr.bf16.mxu1 %v877_v19  ;;  %v889_v31 = vld [vmem:[%s1087_s26 + $0x38] sm:$0xff]  }
  0x38   : > { %777 = vmatprep.mubr.bf16.mxu1 %v883_v21 }
  0x3a   : > { %760 = vmatpush3.bf16.msra.mxu0 %v877_v19  ;;  %796 = vmatpush3.bf16.msra.mxu1 %v877_v19 }
  0x3b   : > { %761 = vmatprep.subr.bf16.mxu0 %v878_v22  ;;  %789 = vmatprep.subr.bf16.mxu1 %v878_v22 }
  0x3e   : > { %762 = vmatpush3.bf16.msra.mxu0 %v878_v22  ;;  %797 = vmatpush3.bf16.msra.mxu1 %v878_v22 }
  0x3f   : > { %763 = vmatprep.subr.bf16.mxu0 %v879_v23  ;;  %790 = vmatprep.subr.bf16.mxu1 %v879_v23 }
  0x42   : > { %764 = vmatpush3.bf16.msra.mxu0 %v879_v23  ;;  %798 = vmatpush3.bf16.msra.mxu1 %v879_v23 }
  0x43   : > { %765 = vmatprep.subr.bf16.mxu0 %v880_v24  ;;  %791 = vmatprep.subr.bf16.mxu1 %v880_v24 }
  0x46   : > { %766 = vmatpush3.bf16.msra.mxu0 %v880_v24  ;;  %799 = vmatpush3.bf16.msra.mxu1 %v880_v24 }
  0x47   : > { %767 = vmatprep.subr.bf16.mxu0 %v881_v25  ;;  %792 = vmatprep.subr.bf16.mxu1 %v881_v25 }
  0x4a   : > { %768 = vmatpush3.bf16.msra.mxu0 %v881_v25  ;;  %800 = vmatpush3.bf16.msra.mxu1 %v881_v25 }
  0x4d   : > { %770 = vmatmul.mubr.bf16.vlgmr.msra.gmra.mrb[0].mxu0 %v884_v26  ;;  %778 = vmatmul.mubr.bf16.vlgmr.msra.gmra.mrb[0].mxu1 %v885_v27 }
  0x4e   : > { %773 = vmatprep.mubr.bf16.mxu0 %v886_v28  ;;  %781 = vmatprep.mubr.bf16.mxu1 %v887_v29 }
  0x55   : > { %774 = vmatmul.mubr.bf16.gmra.mrb[4].mxu0 %v888_v30  ;;  %782 = vmatmul.mubr.bf16.gmra.mrb[4].mxu1 %v889_v31 }
 0x120   : > { %v771_v32 = vpop.f32.mrb[0].mxu0  ;;  %v779_v33 = vpop.f32.mrb[0].mxu1 }
 0x121   : > { %504 = vst [vmem:[%s1103_s3 + $0x10] sm:$0xff] %v771_v32  ;;  %512 = vst [vmem:[%s1103_s3 + $0x50] sm:$0xff] %v779_v33  ;;  %v439_v34 = vpop.f32.mrb[1].mxu0  ;;  %v471_v35 = vpop.f32.mrb[1].mxu1 }
 0x122   : > { %502 = vst [vmem:[%s1103_s3] sm:$0xff] %v439_v34  ;;  %510 = vst [vmem:[%s1103_s3 + $0x40] sm:$0xff] %v471_v35  ;;  %v772_v36 = vpop.f32.mrb[2].mxu0  ;;  %v780_v37 = vpop.f32.mrb[2].mxu1 }
 0x123   : > { %505 = vst [vmem:[%s1103_s3 + $0x18] sm:$0xff] %v772_v36  ;;  %513 = vst [vmem:[%s1103_s3 + $0x58] sm:$0xff] %v780_v37  ;;  %v442_v38 = vpop.f32.mrb[3].mxu0  ;;  %v474_v39 = vpop.f32.mrb[3].mxu1 }
 0x124   : > { %503 = vst [vmem:[%s1103_s3 + $0x8] sm:$0xff] %v442_v38  ;;  %511 = vst [vmem:[%s1103_s3 + $0x48] sm:$0xff] %v474_v39 }
 0x126   : > { %524 = sbr.rel (!%p1044_p9) target bundleno = 310 (0x136), region = 73 }
 0x128   : > { %v775_v40 = vpop.f32.mrb[4].mxu0  ;;  %v783_v41 = vpop.f32.mrb[4].mxu1  ;;  %v591_v50 = vld [vmem:[%s1103_s3 + $0x10] sm:$0xff] (%p1044_p9) }
 0x129   : > { %508 = vst [vmem:[%s1103_s3 + $0x30] sm:$0xff] %v775_v40  ;;  %516 = vst [vmem:[%s1103_s3 + $0x70] sm:$0xff] %v783_v41  ;;  %v455_v42 = vpop.f32.mrb[5].mxu0  ;;  %v487_v43 = vpop.f32.mrb[5].mxu1  ;;  %v587_v48 = vld [vmem:[%s1103_s3] sm:$0xff] (%p1044_p9)  ;;  %v607_v58 = vld [vmem:[%s1103_s3 + $0x50] sm:$0xff] (%p1044_p9) }
 0x12a   : > { %506 = vst [vmem:[%s1103_s3 + $0x20] sm:$0xff] %v455_v42  ;;  %514 = vst [vmem:[%s1103_s3 + $0x60] sm:$0xff] %v487_v43  ;;  %v776_v44 = vpop.f32.mrb[6].mxu0  ;;  %v784_v45 = vpop.f32.mrb[6].mxu1  ;;  %v593_v51 = vld [vmem:[%s1103_s3 + $0x18] sm:$0xff] (%p1044_p9)  ;;  %v603_v56 = vld [vmem:[%s1103_s3 + $0x40] sm:$0xff] (%p1044_p9) }
 0x12b   : > { %509 = vst [vmem:[%s1103_s3 + $0x38] sm:$0xff] %v776_v44  ;;  %517 = vst [vmem:[%s1103_s3 + $0x78] sm:$0xff] %v784_v45  ;;  %v458_v46 = vpop.f32.mrb[7].mxu0  ;;  %v490_v47 = vpop.f32.mrb[7].mxu1  ;;  %v589_v49 = vld [vmem:[%s1103_s3 + $0x8] sm:$0xff] (%p1044_p9)  ;;  %v609_v59 = vld [vmem:[%s1103_s3 + $0x58] sm:$0xff] (%p1044_p9) }
 0x12c   : > { %507 = vst [vmem:[%s1103_s3 + $0x28] sm:$0xff] %v458_v46  ;;  %515 = vst [vmem:[%s1103_s3 + $0x68] sm:$0xff] %v490_v47  ;;  %v605_v57 = vld [vmem:[%s1103_s3 + $0x48] sm:$0xff] (%p1044_p9) }
 0x12d   : > { %588 = vst [vmem:[%s529_s14] sm:$0xff] %v587_v48  ;;  %590 = vst [vmem:[%s529_s14 + $0x78] sm:$0xff] %v589_v49 }
 0x12e   : > { %592 = vst [vmem:[%s529_s14 + $0xf0] sm:$0xff] %v591_v50  ;;  %594 = vst [vmem:[%s529_s14 + $0x168] sm:$0xff] %v593_v51 }
 0x12f   : > { %604 = vst [vmem:[%s529_s14 + $0x3c0] sm:$0xff] %v603_v56  ;;  %606 = vst [vmem:[%s529_s14 + $0x438] sm:$0xff] %v605_v57 }
 0x130   : > { %v599_v54 = vld [vmem:[%s1103_s3 + $0x30] sm:$0xff]  ;;  %608 = vst [vmem:[%s529_s14 + $0x4b0] sm:$0xff] %v607_v58  ;;  %610 = vst [vmem:[%s529_s14 + $0x528] sm:$0xff] %v609_v59 }
 0x131   : > { %v595_v52 = vld [vmem:[%s1103_s3 + $0x20] sm:$0xff]  ;;  %v615_v62 = vld [vmem:[%s1103_s3 + $0x70] sm:$0xff]  ;;  %600 = vst [vmem:[%s529_s14 + $0x2d0] sm:$0xff] %v599_v54 }
 0x132   : > { %v601_v55 = vld [vmem:[%s1103_s3 + $0x38] sm:$0xff]  ;;  %v611_v60 = vld [vmem:[%s1103_s3 + $0x60] sm:$0xff]  ;;  %596 = vst [vmem:[%s529_s14 + $0x1e0] sm:$0xff] %v595_v52  ;;  %616 = vst [vmem:[%s529_s14 + $0x690] sm:$0xff] %v615_v62 }
 0x133   : > { %v597_v53 = vld [vmem:[%s1103_s3 + $0x28] sm:$0xff]  ;;  %602 = vst [vmem:[%s529_s14 + $0x348] sm:$0xff] %v601_v55  ;;  %612 = vst [vmem:[%s529_s14 + $0x5a0] sm:$0xff] %v611_v60  ;;  %v617_v63 = vld [vmem:[%s1103_s3 + $0x78] sm:$0xff] }
 0x134   : > { %v613_v61 = vld [vmem:[%s1103_s3 + $0x68] sm:$0xff]  ;;  %598 = vst [vmem:[%s529_s14 + $0x258] sm:$0xff] %v597_v53  ;;  %618 = vst [vmem:[%s529_s14 + $0x708] sm:$0xff] %v617_v63 }
 0x135   : > { %614 = vst [vmem:[%s529_s14 + $0x618] sm:$0xff] %v613_v61 }
 0x136 PF: > { %s12_s17 = sadd.s32 1, %s960_s17   ;;  %s1175_s9 = smov %s932_s10 }
 0x137   : > { %p9_p1 = scmp.ge.s32.totalorder %s12_s17, 47   ;;  %s1176_s10 = smov %s1049_s28 }
 0x138   : > { %s1177_s11 = smov %s940_s12  ;;  %s1178_s12 = smov %s1038_s24 }
 0x139   : > { %s1179_s13 = smov %s952_s15  ;;  %s1180_s14 = smov %s956_s16 }
 0x13a   : > { %s1181_s15 = smov %s1184_s19  ;;  %s1182_s16 = smov %s1188_s20 }
 0x13b   :  { %11 = sbr.rel (!%p9_p1) target bundleno = 5 (0x5), region = 145 }

</bundles_post_ra>
